<compile_context>
chip_gen: v7x
topology: tpu7x:2x2x1
jax: 0.10.0
libtpu: 0.0.40
codegen_flags: <defaults>
</compile_context>

<pallas_src>
import functools
import math

import jax
import jax.numpy as jnp
import numpy as np
from jax.experimental import pallas as pl
from jax.experimental.pallas import tpu as pltpu

NUM_PLANT_CLASSES = 12          # stand-in for metadata.NUM_PLANT_CLASSES
STEM_OUT_FEATS = 32             # synthetic stem width (real resnet: 2048)
FC_DIM = 64                     # model_config['fc_dim'] (small for the demo)
BN_EPS = 1e-3                   # BatchNormAct2d(eps=0.001)
LANE = 128


def _finetune_head_kernel(patches_ref, w_stem_ref, w_pw_ref, cpack_ref,
                          pooled_ref, *, tb, ho, wo):
    """Stem conv + pointwise + BN-folded 2x2 depthwise + SiLU + masked avg pool.

    patches_ref: (tb*ho*wo, kdim_p) im2col rows; lane 4*Cin holds a constant 1
                 so the stem bias rides inside the stem matmul.
    cpack rows:  0 = pointwise bias, 1..4 = BN-scaled depthwise taps
                 (0,0),(0,1),(1,0),(1,1), 5 = BN-folded depthwise bias.
    All channel-sized tensors are lane-padded to fcp (multiple of 128).
    """
    rows = tb * ho * wo
    fcp = cpack_ref.shape[-1]

    c = cpack_ref[...]                                    # load once, index rows

    # ---- synthetic stem: 2x2 stride-2 conv (bias folded into matmul) + ReLU --
    feats = jnp.maximum(
        jnp.dot(patches_ref[...], w_stem_ref[...],
                preferred_element_type=jnp.float32), 0.0)      # (rows, cstem)

    # ---- dropout: identity in eval mode --------------------------------------

    # ---- dwsconv[0]: pointwise 1x1 conv == channel matmul --------------------
    h = jnp.dot(feats, w_pw_ref[...],
                preferred_element_type=jnp.float32) + c[0:1, :]  # (rows, fcp)

    # ---- dwsconv[1]: depthwise 2x2 conv (groups=fc), BN folded into weights --
    # Uniform-shape rolls along the sublane (flattened row) axis; every wrap
    # position (j==wo-1, i==ho-1, incl. cross-image wraps) is masked out of the
    # average below, so the rotation artifacts never reach the output.
    h_r = pltpu.roll(h, shift=rows - 1, axis=0)            # h[q+1]      (i, j+1)
    h_d = pltpu.roll(h, shift=rows - wo, axis=0)           # h[q+wo]     (i+1, j)
    h_dr = pltpu.roll(h_r, shift=rows - wo, axis=0)        # h[q+wo+1]   (i+1,j+1)
    dw = (h * c[1:2, :] + h_r * c[2:3, :]
          + h_d * c[3:4, :] + h_dr * c[4:5, :] + c[5:6, :])

    # ---- BatchNormAct2d: BN already folded on the host; apply SiLU -----------
    y = dw * jax.nn.sigmoid(dw)

    # ---- SelectAdaptivePool2d('avg', flatten=True) over the valid window -----
    inv_area = 1.0 / ((ho - 1) * (wo - 1))
    row_i = jax.lax.broadcasted_iota(jnp.int32, (ho, wo, fcp), 0)
    col_i = jax.lax.broadcasted_iota(jnp.int32, (ho, wo, fcp), 1)
    valid = jnp.where((row_i < ho - 1) & (col_i < wo - 1), inv_area, 0.0)
    valid = valid.reshape(ho * wo, fcp)                    # (Ho*Wo, fcp)
    ym = y.reshape(tb, ho * wo, fcp) * valid
    pooled_ref[...] = jnp.sum(ym, axis=1).reshape(pooled_ref.shape)


def finetuning_cnn_forward(x, params, *, block_b=None):
    """x: (B, Cin, H, W) float32 NCHW image -> (B, NUM_PLANT_CLASSES) logits."""
    B, Cin, H, W = x.shape
    assert H == W, "input height and width must be equal"
    assert H % 2 == 0
    ho, wo = H // 2, W // 2
    assert (ho * wo) % 8 == 0, "Ho*Wo must be a multiple of 8 (sublane tiling)"
    cstem = params["w_stem"].shape[-1]
    fc = params["w_pw"].shape[-1]
    fcp = ((fc + LANE - 1) // LANE) * LANE            # lane-dense channel width
    kdim = 4 * Cin
    kdim_p = ((kdim + 1 + LANE - 1) // LANE) * LANE   # +1 lane carries stem bias

    # Batch tile: ~512 matmul rows/step, but >=2 grid steps when B >= 2 so both
    # v7x TensorCores get work (no measurable effect on 1-TC v5e/v6e).
    if block_b is None:
        block_b = max(1, min(B, pl.cdiv(512, ho * wo)))
        if B >= 2:
            block_b = min(block_b, pl.cdiv(B, 2))
    n_steps = pl.cdiv(B, block_b)
    bp = n_steps * block_b
    rows_blk = block_b * ho * wo

    # im2col for the 2x2 stride-2 synthetic stem conv, flattened in the wrapper
    # to lane-dense (bp*Ho*Wo, kdim_p) rows (one fused XLA copy, full-width DMA).
    xh = jnp.transpose(x, (0, 2, 3, 1))                        # (B, H, W, Cin)
    patches = (xh.reshape(B, ho, 2, wo, 2, Cin)
                 .transpose(0, 1, 3, 2, 4, 5)
                 .reshape(B * ho * wo, kdim))
    patches = jnp.concatenate(
        [patches, jnp.ones((B * ho * wo, 1), jnp.float32)], axis=1)
    patches = jnp.pad(patches, ((0, (bp - B) * ho * wo),
                                (0, kdim_p - (kdim + 1))))

    # Stem weights zero-padded to kdim_p contraction rows; row kdim = bias.
    w_stem_p = jnp.zeros((kdim_p, cstem), jnp.float32)
    w_stem_p = w_stem_p.at[:kdim].set(params["w_stem"])
    w_stem_p = w_stem_p.at[kdim].set(params["b_stem"][0])

    # Fold eval BatchNorm into the depthwise conv, pack all per-channel (1, fc)
    # vectors into one (6, fc) tensor, and lane-pad channel-sized tensors.
    s = params["bn_g"] * jax.lax.rsqrt(params["bn_v"] + BN_EPS)          # (1, fc)
    w_dw_eff = params["w_dw"] * s                                        # (4, fc)
    b_dw_eff = (params["b_dw"] - params["bn_m"]) * s + params["bn_b"]    # (1, fc)
    cpack = jnp.concatenate([params["b_pw"], w_dw_eff, b_dw_eff], axis=0)
    cpack_p = jnp.pad(cpack, ((0, 0), (0, fcp - fc)))
    w_pw_p = jnp.pad(params["w_pw"], ((0, 0), (0, fcp - fc)))

    kernel = functools.partial(_finetune_head_kernel, tb=block_b, ho=ho, wo=wo)

    # Rough VMEM budget (double-buffered IO + elementwise intermediates).
    vmem_est = 4 * (2 * rows_blk * kdim_p
                    + 2 * (kdim_p * cstem + cstem * fcp + 6 * fcp)
                    + 2 * block_b * fcp
                    + rows_blk * (cstem + 5 * fcp))
    vmem_limit = int(min(max(vmem_est, 32 * 1024 * 1024), 64 * 1024 * 1024))

    cost = pl.CostEstimate(
        flops=2 * bp * ho * wo * (kdim_p * cstem + cstem * fcp),
        transcendentals=bp * ho * wo * fcp,
        bytes_accessed=4 * (bp * ho * wo * kdim_p + kdim_p * cstem
                            + cstem * fcp + 6 * fcp + bp * fcp),
    )

    pooled = pl.pallas_call(
        kernel,
        out_shape=jax.ShapeDtypeStruct((n_steps, block_b, fcp), jnp.float32),
        grid=(n_steps,),
        in_specs=[
            pl.BlockSpec((rows_blk, kdim_p), lambda b: (b, 0)),
            pl.BlockSpec((kdim_p, cstem), lambda b: (0, 0)),
            pl.BlockSpec((cstem, fcp), lambda b: (0, 0)),
            pl.BlockSpec((6, fcp), lambda b: (0, 0)),
        ],
        out_specs=pl.BlockSpec((1, block_b, fcp), lambda b: (b, 0, 0)),
        compiler_params=pltpu.CompilerParams(
            dimension_semantics=("parallel",),
            vmem_limit_bytes=vmem_limit),
        cost_estimate=cost,
    )(patches, w_stem_p, w_pw_p, cpack_p)

    pooled = pooled.reshape(bp, fcp)[:B, :fc]

    # Classifier hoisted out of the per-image kernel: one batched dense matmul.
    logits = jnp.dot(pooled, params["w_cls"],
                     precision=jax.lax.Precision.HIGHEST) + params["b_cls"]
    return logits


def make_params(key, cin):
    """Deterministic synthetic parameters (kaiming-normal-style)."""
    ks = jax.random.split(key, 10)
    cstem, fc, ncls = STEM_OUT_FEATS, FC_DIM, NUM_PLANT_CLASSES

    def kaiming(k, shape, fan_out):
        return jax.random.normal(k, shape, jnp.float32) * math.sqrt(2.0 / fan_out)

    params = {
        # synthetic stem conv: 2x2 stride-2, Cin -> cstem (im2col layout)
        "w_stem": kaiming(ks[0], (4 * cin, cstem), cstem * 4),
        "b_stem": jnp.zeros((1, cstem), jnp.float32),
        # dwsconv pointwise 1x1: cstem -> fc
        "w_pw": kaiming(ks[1], (cstem, fc), fc),
        "b_pw": jax.random.uniform(ks[2], (1, fc), jnp.float32,
                                   -1.0 / math.sqrt(fc), 1.0 / math.sqrt(fc)),
        # dwsconv depthwise 2x2 (groups=fc): rows = taps (00, 01, 10, 11)
        "w_dw": kaiming(ks[3], (4, fc), 4),
        "b_dw": jax.random.uniform(ks[4], (1, fc), jnp.float32, -0.5, 0.5),
        # BatchNormAct2d(fc, eps=1e-3) running stats + affine
        "bn_g": 1.0 + 0.1 * jax.random.normal(ks[5], (1, fc), jnp.float32),
        "bn_b": 0.1 * jax.random.normal(ks[6], (1, fc), jnp.float32),
        "bn_m": 0.1 * jax.random.normal(ks[7], (1, fc), jnp.float32),
        "bn_v": 1.0 + 0.1 * jax.random.uniform(ks[8], (1, fc), jnp.float32),
        # classifier: Linear(fc, num_classes)
        "w_cls": kaiming(ks[9], (fc, ncls), ncls),
        "b_cls": jnp.zeros((1, ncls), jnp.float32),
    }
    return params


def reference_forward(x, params):
    """Pure-JAX reference (same math, unfused params) for correctness check."""
    B, Cin, H, W = x.shape
    ho, wo = H // 2, W // 2
    fc = params["w_pw"].shape[-1]
    xh = jnp.transpose(x, (0, 2, 3, 1))
    patches = (xh.reshape(B, ho, 2, wo, 2, Cin)
                 .transpose(0, 1, 3, 2, 4, 5)
                 .reshape(B, ho * wo, 4 * Cin))
    hi = jax.lax.Precision.HIGHEST
    feats = jnp.maximum(
        jnp.einsum("bpk,kc->bpc", patches, params["w_stem"], precision=hi)
        + params["b_stem"], 0.0)
    h = jnp.einsum("bpc,cf->bpf", feats, params["w_pw"], precision=hi) + params["b_pw"]
    h4 = h.reshape(B, ho, wo, fc)
    wdw = params["w_dw"]
    dw = (h4[:, :-1, :-1, :] * wdw[0] + h4[:, :-1, 1:, :] * wdw[1]
          + h4[:, 1:, :-1, :] * wdw[2] + h4[:, 1:, 1:, :] * wdw[3]) + params["b_dw"]
    y = ((dw - params["bn_m"]) * jax.lax.rsqrt(params["bn_v"] + BN_EPS)
         * params["bn_g"] + params["bn_b"])
    y = y * jax.nn.sigmoid(y)
    pooled = jnp.mean(y, axis=(1, 2))
    return jnp.einsum("bf,fc->bc", pooled, params["w_cls"], precision=hi) + params["b_cls"]


if __name__ == "__main__":
    key = jax.random.PRNGKey(0)
    kx, kp = jax.random.split(key)

    B, Cin, H, W = 2, 4, 16, 16
    x = jax.random.normal(kx, (B, Cin, H, W), jnp.float32)
    params = make_params(kp, Cin)

    fwd = jax.jit(finetuning_cnn_forward)
    out = jax.block_until_ready(fwd(x, params))
    assert out.shape == (B, NUM_PLANT_CLASSES), out.shape

    ref = jax.block_until_ready(reference_forward(x, params))
    np.testing.assert_allclose(np.asarray(out), np.asarray(ref),
                               rtol=1e-3, atol=1e-3)
    print("KERNEL_OK")
</pallas_src>

<mosaic_0001>
module attributes {stable_mosaic.version = 11 : i64} {
  func.func @_finetune_head_kernel(%arg0: i32, %arg1: memref<64x128xf32, #tpu.memory_space<vmem>>, %arg2: memref<128x32xf32, #tpu.memory_space<vmem>>, %arg3: memref<32x128xf32, #tpu.memory_space<vmem>>, %arg4: memref<6x128xf32, #tpu.memory_space<vmem>>, %arg5: memref<1x1x128xf32, #tpu.memory_space<vmem>>) attributes {dimension_semantics = [#tpu.dimension_semantics<parallel>], iteration_bounds = array<i64: 2>, scalar_prefetch = 0 : i64, scratch_operands = 0 : i64, tpu.core_type = #tpu.core_type<tc>, window_params = [{transform_indices = @transform_0, window_bounds = array<i64: 64, 128>}, {pipeline_mode = #tpu.pipeline_mode<synchronous>, transform_indices = @transform_1, window_bounds = array<i64: 128, 32>}, {pipeline_mode = #tpu.pipeline_mode<synchronous>, transform_indices = @transform_2, window_bounds = array<i64: 32, 128>}, {pipeline_mode = #tpu.pipeline_mode<synchronous>, transform_indices = @transform_3, window_bounds = array<i64: 6, 128>}, {transform_indices = @transform_4, window_bounds = array<i64: 1, 1, 128>}]} {
    %c0 = arith.constant 0 : index
    %c0_0 = arith.constant 0 : index
    %0 = vector.load %arg4[%c0, %c0_0] : memref<6x128xf32, #tpu.memory_space<vmem>>, vector<6x128xf32>
    %c0_1 = arith.constant 0 : index
    %c0_2 = arith.constant 0 : index
    %1 = vector.load %arg1[%c0_1, %c0_2] : memref<64x128xf32, #tpu.memory_space<vmem>>, vector<64x128xf32>
    %c0_3 = arith.constant 0 : index
    %c0_4 = arith.constant 0 : index
    %2 = vector.load %arg2[%c0_3, %c0_4] : memref<128x32xf32, #tpu.memory_space<vmem>>, vector<128x32xf32>
    %cst = arith.constant dense<0.000000e+00> : vector<64x32xf32>
    %3 = tpu.matmul %1, %2, %cst {dimension_numbers = #tpu.dot_dimension_numbers<[1], [0], [0], [1], [0, 0, 1, 1], [], []>} : vector<64x128xf32>, vector<128x32xf32>, vector<64x32xf32> -> vector<64x32xf32>
    %cst_5 = arith.constant 0.000000e+00 : f32
    %4 = vector.broadcast %cst_5 : f32 to vector<64x32xf32>
    %5 = arith.maximumf %3, %4 : vector<64x32xf32>
    %c0_6 = arith.constant 0 : index
    %c0_7 = arith.constant 0 : index
    %6 = vector.load %arg3[%c0_6, %c0_7] : memref<32x128xf32, #tpu.memory_space<vmem>>, vector<32x128xf32>
    %cst_8 = arith.constant dense<0.000000e+00> : vector<64x128xf32>
    %7 = tpu.matmul %5, %6, %cst_8 {dimension_numbers = #tpu.dot_dimension_numbers<[1], [0], [0], [1], [0, 0, 1, 1], [], []>} : vector<64x32xf32>, vector<32x128xf32>, vector<64x128xf32> -> vector<64x128xf32>
    %8 = vector.extract_strided_slice %0 {offsets = [0, 0], sizes = [1, 128], strides = [1, 1]} : vector<6x128xf32> to vector<1x128xf32>
    %9 = vector.broadcast %8 : vector<1x128xf32> to vector<64x128xf32>
    %10 = arith.addf %7, %9 : vector<64x128xf32>
    %c63_i32 = arith.constant 63 : i32
    %11 = tpu.dynamic_rotate %10 by %c63_i32 dim 0 : vector<64x128xf32>, i32 -> vector<64x128xf32>
    %c56_i32 = arith.constant 56 : i32
    %12 = tpu.dynamic_rotate %10 by %c56_i32 dim 0 : vector<64x128xf32>, i32 -> vector<64x128xf32>
    %c56_i32_9 = arith.constant 56 : i32
    %13 = tpu.dynamic_rotate %11 by %c56_i32_9 dim 0 : vector<64x128xf32>, i32 -> vector<64x128xf32>
    %14 = vector.extract_strided_slice %0 {offsets = [1, 0], sizes = [1, 128], strides = [1, 1]} : vector<6x128xf32> to vector<1x128xf32>
    %15 = vector.broadcast %14 : vector<1x128xf32> to vector<64x128xf32>
    %16 = arith.mulf %10, %15 : vector<64x128xf32>
    %17 = vector.extract_strided_slice %0 {offsets = [2, 0], sizes = [1, 128], strides = [1, 1]} : vector<6x128xf32> to vector<1x128xf32>
    %18 = vector.broadcast %17 : vector<1x128xf32> to vector<64x128xf32>
    %19 = arith.mulf %11, %18 : vector<64x128xf32>
    %20 = arith.addf %16, %19 : vector<64x128xf32>
    %21 = vector.extract_strided_slice %0 {offsets = [3, 0], sizes = [1, 128], strides = [1, 1]} : vector<6x128xf32> to vector<1x128xf32>
    %22 = vector.broadcast %21 : vector<1x128xf32> to vector<64x128xf32>
    %23 = arith.mulf %12, %22 : vector<64x128xf32>
    %24 = arith.addf %20, %23 : vector<64x128xf32>
    %25 = vector.extract_strided_slice %0 {offsets = [4, 0], sizes = [1, 128], strides = [1, 1]} : vector<6x128xf32> to vector<1x128xf32>
    %26 = vector.broadcast %25 : vector<1x128xf32> to vector<64x128xf32>
    %27 = arith.mulf %13, %26 : vector<64x128xf32>
    %28 = arith.addf %24, %27 : vector<64x128xf32>
    %29 = vector.extract_strided_slice %0 {offsets = [5, 0], sizes = [1, 128], strides = [1, 1]} : vector<6x128xf32> to vector<1x128xf32>
    %30 = vector.broadcast %29 : vector<1x128xf32> to vector<64x128xf32>
    %31 = arith.addf %28, %30 : vector<64x128xf32>
    %32 = arith.negf %31 : vector<64x128xf32>
    %33 = math.exp %32 : vector<64x128xf32>
    %cst_10 = arith.constant 1.000000e+00 : f32
    %34 = vector.broadcast %cst_10 : f32 to vector<64x128xf32>
    %35 = arith.addf %34, %33 : vector<64x128xf32>
    %36 = arith.divf %34, %35 : vector<64x128xf32>
    %37 = arith.mulf %31, %36 : vector<64x128xf32>
    %38 = tpu.iota {dimensions = array<i32: 0>} : vector<8x8x128xi32>
    %39 = tpu.iota {dimensions = array<i32: 1>} : vector<8x8x128xi32>
    %c7_i32 = arith.constant 7 : i32
    %40 = vector.broadcast %c7_i32 : i32 to vector<8x8x128xi32>
    %41 = arith.cmpi slt, %38, %40 : vector<8x8x128xi32>
    %c7_i32_11 = arith.constant 7 : i32
    %42 = vector.broadcast %c7_i32_11 : i32 to vector<8x8x128xi32>
    %43 = arith.cmpi slt, %39, %42 : vector<8x8x128xi32>
    %44 = arith.andi %41, %43 : vector<8x8x128xi1>
    %cst_12 = arith.constant 0.0204081628 : f32
    %cst_13 = arith.constant 0.000000e+00 : f32
    %45 = vector.broadcast %cst_12 : f32 to vector<8x8x128xf32>
    %46 = vector.broadcast %cst_13 : f32 to vector<8x8x128xf32>
    %47 = arith.select %44, %45, %46 : vector<8x8x128xi1>, vector<8x8x128xf32>
    %48 = vector.shape_cast %47 : vector<8x8x128xf32> to vector<64x128xf32>
    %49 = vector.shape_cast %37 : vector<64x128xf32> to vector<1x64x128xf32>
    %50 = vector.shape_cast %48 : vector<64x128xf32> to vector<1x64x128xf32>
    %51 = arith.mulf %49, %50 : vector<1x64x128xf32>
    %cst_14 = arith.constant dense<0.000000e+00> : vector<1x128xf32>
    %52 = vector.multi_reduction <add>, %51, %cst_14 [1] : vector<1x64x128xf32> to vector<1x128xf32>
    %53 = vector.shape_cast %52 : vector<1x128xf32> to vector<1x1x128xf32>
    %c0_15 = arith.constant 0 : index
    %c0_16 = arith.constant 0 : index
    %c0_17 = arith.constant 0 : index
    %54 = vector.load %arg5[%c0_15, %c0_16, %c0_17] : memref<1x1x128xf32, #tpu.memory_space<vmem>>, vector<1x1x128xf32>
    tpu.vector_store %arg5[%c0_15, %c0_16, %c0_17], %53 {strides = array<i32>} : memref<1x1x128xf32, #tpu.memory_space<vmem>>, vector<1x1x128xf32>,
    return
  }
  func.func @transform_0(%arg0: i32) -> (i32, i32) {
    %c0_i32 = arith.constant 0 : i32
    %c0_i32_0 = arith.constant 0 : i32
    return %arg0, %c0_i32 : i32, i32
  }
  func.func @transform_1(%arg0: i32) -> (i32, i32) {
    %c0_i32 = arith.constant 0 : i32
    %c0_i32_0 = arith.constant 0 : i32
    %c0_i32_1 = arith.constant 0 : i32
    return %c0_i32, %c0_i32_0 : i32, i32
  }
  func.func @transform_2(%arg0: i32) -> (i32, i32) {
    %c0_i32 = arith.constant 0 : i32
    %c0_i32_0 = arith.constant 0 : i32
    %c0_i32_1 = arith.constant 0 : i32
    return %c0_i32, %c0_i32_0 : i32, i32
  }
  func.func @transform_3(%arg0: i32) -> (i32, i32) {
    %c0_i32 = arith.constant 0 : i32
    %c0_i32_0 = arith.constant 0 : i32
    %c0_i32_1 = arith.constant 0 : i32
    return %c0_i32, %c0_i32_0 : i32, i32
  }
  func.func @transform_4(%arg0: i32) -> (i32, i32, i32) {
    %c0_i32 = arith.constant 0 : i32
    %c0_i32_0 = arith.constant 0 : i32
    %c0_i32_1 = arith.constant 0 : i32
    return %arg0, %c0_i32, %c0_i32_0 : i32, i32, i32
  }
}

</mosaic_0001>

<bundles_post_ra>
// kernel: finetuning_cnn_forward.1
= control target key start
LH: loop header
LB: loop body
LE: loop exit
PB: predicated region body
PF: predicated region fallthrough
CT: control target
= control target key end

     0   :  { %s944_s15 = smov 0   ;;  %s1159_s0 = inlined_call_operand.vmem [shape: f32[128,128], index: 0, kind: input, shape index: {}]   ;;  %s1160_s1 = inlined_call_operand.vmem [shape: f32[128,32], index: 1, kind: input, shape index: {}]   ;;  %s1161_s2 = inlined_call_operand.vmem [shape: f32[32,128], index: 2, kind: input, shape index: {}]   ;;  %s1162_s3 = inlined_call_operand.vmem [shape: f32[6,128], index: 3, kind: input, shape index: {}]   ;;  %s1163_s4 = inlined_call_operand.vmem [shape: f32[2,1,128], index: 4, kind: output, shape index: {}]  }
   0x1 LB: > { %s950_s16 = sadd.s32 4294967295, %s916_s15   ;;  %p708_p0 = scmp.ge.s32.totalorder %s916_s15, 1  ;;  %s916_s15 = sphi %s944_s15, %s14_s15  }
   0x2   : > { %p163_p1 = scmp.lt.s32.totalorder %s916_s15, 3 }
   0x4   : > { %p164_p2 = pnand %p708_p0, %p163_p1 }
   0x5   : > { %v205_v0 = vld [vmem:[%s1160_s1] sm:$0xff] (!%p164_p2)  ;;  %v206_v1 = vld [vmem:[%s1160_s1 + $0x8] sm:$0xff] (!%p164_p2)  ;;  %v207_v2 = vld [vmem:[%s1160_s1 + $0x10] sm:$0xff] (!%p164_p2)  ;;  %s709_s23 = sshll.u32 (!%p164_p2), %s950_s16, 3  ;;  %vm342_vm0 = vcmask (!%p164_p2), 261120   ;;  %v338_v54 = vlaneseq (!%p164_p2)  ;;  %p193_p4 = scmp.lt.s32.totalorder (!%p164_p2), %s950_s16, 1 }
   0x6   : > { %167 = sbr.rel (%p164_p2) target bundleno = 550 (0x226), region = 36  ;;  %v829_v3 = vpack.c.bf16 (!%p164_p2), %v206_v1, %v205_v0  ;;  %v208_v4 = vld [vmem:[%s1160_s1 + $0x18] sm:$0xff] (!%p164_p2)  ;;  %p188_p3 = scmp.lt.s32.totalorder (!%p164_p2), %s709_s23, 15  ;;  %v209_v6 = vld [vmem:[%s1160_s1 + $0x20] sm:$0xff] (!%p164_p2)  ;;  %v210_v7 = vld [vmem:[%s1160_s1 + $0x28] sm:$0xff] (!%p164_p2) }
   0x7   : > { %v833_v5 = vpack.c.bf16 (!%p164_p2), %v208_v4, %v207_v2  ;;  %v837_v8 = vpack.c.bf16 (!%p164_p2), %v210_v7, %v209_v6  ;;  %v334_v9 = vld [vmem:[%s1161_s2] sm:$0xff] (!%p164_p2)  ;;  %v335_v10 = vld [vmem:[%s1161_s2 + $0x8] sm:$0xff] (!%p164_p2)  ;;  %v211_v11 = vld [vmem:[%s1160_s1 + $0x30] sm:$0xff] (!%p164_p2)  ;;  %v1036_v55 = vshrl.u32 (!%p164_p2), %v338_v54, 7 }
   0x8   : > { %830 = vmatprep.subr.bf16.mxu0 (!%p164_p2), %v829_v3  ;;  %v212_v12 = vld [vmem:[%s1160_s1 + $0x38] sm:$0xff] (!%p164_p2)  ;;  %v861_v13 = vpack.c.bf16 (!%p164_p2), %v335_v10, %v334_v9  ;;  %v213_v16 = vld [vmem:[%s1160_s1 + $0x40] sm:$0xff] (!%p164_p2)  ;;  %v214_v17 = vld [vmem:[%s1160_s1 + $0x48] sm:$0xff] (!%p164_p2) }
   0x9   : > { %832 = vmatpush3.bf16.msra.mxu0 (!%p164_p2), %v829_v3  ;;  %v841_v15 = vpack.c.bf16 (!%p164_p2), %v212_v12, %v211_v11  ;;  %v845_v18 = vpack.c.bf16 (!%p164_p2), %v214_v17, %v213_v16  ;;  %v215_v19 = vld [vmem:[%s1160_s1 + $0x50] sm:$0xff] (!%p164_p2)  ;;  %v216_v20 = vld [vmem:[%s1160_s1 + $0x58] sm:$0xff] (!%p164_p2)  ;;  %v217_v22 = vld [vmem:[%s1160_s1 + $0x60] sm:$0xff] (!%p164_p2)  ;;  %v340_v56 = vsub.s32 (!%p164_p2), 0, %v1036_v55  ;;  %v493_v59 = vsub.s32 (!%p164_p2), 1, %v1036_v55 }
   0xa   : > { %834 = vmatprep.subr.bf16.mxu0 (!%p164_p2), %v833_v5  ;;  %862 = vmatprep.subr.bf16.mxu1 (!%p164_p2), %v861_v13  ;;  %v849_v21 = vpack.c.bf16 (!%p164_p2), %v216_v20, %v215_v19  ;;  %v218_v23 = vld [vmem:[%s1160_s1 + $0x68] sm:$0xff] (!%p164_p2)  ;;  %v219_v25 = vld [vmem:[%s1160_s1 + $0x70] sm:$0xff] (!%p164_p2)  ;;  %v220_v26 = vld [vmem:[%s1160_s1 + $0x78] sm:$0xff] (!%p164_p2)  ;;  %v505_v60 = vsub.s32 (!%p164_p2), 2, %v1036_v55  ;;  %v525_v63 = vsub.s32 (!%p164_p2), 3, %v1036_v55  ;;  %vm482_vm1 = vcmp.lt.s32.totalorder (!%p164_p2), %v1036_v55, 7 }
   0xb   : > { %864 = vmatpush3.bf16.msra.mxu1 (!%p164_p2), %v861_v13  ;;  %v853_v24 = vpack.c.bf16 (!%p164_p2), %v218_v23, %v217_v22  ;;  %v857_v27 = vpack.c.bf16 (!%p164_p2), %v220_v26, %v219_v25  ;;  %v336_v35 = vld [vmem:[%s1161_s2 + $0x10] sm:$0xff] (!%p164_p2)  ;;  %v337_v36 = vld [vmem:[%s1161_s2 + $0x18] sm:$0xff] (!%p164_p2)  ;;  %v196_v57 = vld [vmem:[%s1162_s3] sm:$0x3f] (!%p164_p2)  ;;  %v545_v6 = vsub.s32 (!%p164_p2), 4, %v1036_v55 }
   0xc   : > { %v865_v37 = vpack.c.bf16 (!%p164_p2), %v337_v36, %v336_v35  ;;  %v1042_v58 = vrot.slane (!%p164_p2), %v196_v57, %v340_v56  ;;  %v1051_v3 = vrot.slane (!%p164_p2), %v196_v57, %v493_v59  ;;  %v1054_v4 = vrot.slane (!%p164_p2), %v196_v57, %v505_v60 }
   0xd   : > { %s1165_s23 = smov (!%p188_p3, %s709_s23), 15  ;;  %836 = vmatpush3.bf16.msra.mxu0 %v833_v5  ;;  %v1059_v9 = vrot.slane %v196_v57, %v525_v63  ;;  %s1167_s16 = smov (!%p193_p4, %s950_s16), 1 }
   0xe   : > { %s710_s30 = sshll.u32 %s1165_s23, 3  ;;  %838 = vmatprep.subr.bf16.mxu0 %v837_v8  ;;  %866 = vmatprep.subr.bf16.mxu1 %v865_v37  ;;  %s195_s18 = scalar_lea.vmem %s1163_s4, %s1167_s16 }
   0xf   : > { %s988_s17 = scalar_lea.vmem %s1159_s0, %s710_s30  ;;  %868 = vmatpush3.bf16.msra.mxu1 %v865_v37 }
  0x10   : > { %v197_v14 = vld [vmem:[%s988_s17] sm:$0xff]  ;;  %v198_v28 = vld [vmem:[%s988_s17 + $0x8] sm:$0xff]  ;;  %v199_v29 = vld [vmem:[%s988_s17 + $0x10] sm:$0xff] }
  0x11   : > { %797 = vmatprep.mubr.f32.mxu0 %v197_v14  ;;  %840 = vmatpush3.bf16.msra.mxu0 %v837_v8  ;;  %v200_v30 = vld [vmem:[%s988_s17 + $0x18] sm:$0xff]  ;;  %v201_v31 = vld [vmem:[%s988_s17 + $0x20] sm:$0xff]  ;;  %v202_v32 = vld [vmem:[%s988_s17 + $0x28] sm:$0xff]  ;;  %v565_v8 = vsub.s32 5, %v1036_v55 }
  0x12   : > { %842 = vmatprep.subr.bf16.mxu0 %v841_v15  ;;  %v203_v33 = vld [vmem:[%s988_s17 + $0x30] sm:$0xff]  ;;  %v204_v34 = vld [vmem:[%s988_s17 + $0x38] sm:$0xff] }
  0x13   : > { %v1071_v20 = vrot.slane %v196_v57, %v565_v8 }
  0x15   : > { %844 = vmatpush3.bf16.msra.mxu0 %v841_v15 }
  0x16   : > { %846 = vmatprep.subr.bf16.mxu0 %v845_v18 }
  0x19   : > { %848 = vmatpush3.bf16.msra.mxu0 %v845_v18  ;;  %v1069_v18 = vrot.slane %v196_v57, %v545_v6 }
  0x1a   : > { %850 = vmatprep.subr.bf16.mxu0 %v849_v21 }
  0x1d   : > { %852 = vmatpush3.bf16.msra.mxu0 %v849_v21 }
  0x1e   : > { %854 = vmatprep.subr.bf16.mxu0 %v853_v24 }
  0x21   : > { %856 = vmatpush3.bf16.msra.mxu0 %v853_v24 }
  0x22   : > { %858 = vmatprep.subr.bf16.mxu0 %v857_v27 }
  0x25   : > { %860 = vmatpush3.bf16.msra.mxu0 %v857_v27 }
  0x28   : > { %798 = vmatmul.mubr.f32.vlgmr.msra.gmra.mrb[0].mxu0 %v198_v28 }
  0x29   : > { %800 = vmatprep.mubr.f32.mxu0 %v199_v29 }
  0x2c   : > { %801 = vmatmul.mubr.f32.gmra.mrb[2].mxu0 %v200_v30 }
  0x2d   : > { %803 = vmatprep.mubr.f32.mxu0 %v201_v31 }
  0x30   : > { %804 = vmatmul.mubr.f32.gmra.mrb[4].mxu0 %v202_v32 }
  0x31   : > { %806 = vmatprep.mubr.f32.mxu0 %v203_v33 }
  0x34   : > { %807 = vmatmul.mubr.f32.gmra.mrb[6].mxu0 %v204_v34 }
  0xfb   : > { %v799_v38 = vpop.f32.mrb[0].mxu0 }
  0xfc   : > { %v287_v39 = vpop.f32.mrb[1].mxu0  ;;  %v327_v41 = vmax.f32 %v799_v38, 0.0 }
  0xfd   : > { %v326_v40 = vmax.f32 %v287_v39, 0.0 }
  0xff   : > { %v802_v42 = vpop.f32.mrb[2].mxu0  ;;  %817 = vmatprep.mubr.msk.f32.mxu1 %vm342_vm0, %v326_v40 }
 0x100   : > { %v297_v43 = vpop.f32.mrb[3].mxu0  ;;  %818 = vmatmul.mubr.msk.f32.vlgmr.msra.gmra.mrb[0].mxu1 %vm342_vm0, %v327_v41  ;;  %v329_v45 = vmax.f32 %v802_v42, 0.0 }
 0x101   : > { %v328_v44 = vmax.f32 %v297_v43, 0.0 }
 0x103   : > { %v805_v46 = vpop.f32.mrb[4].mxu0  ;;  %820 = vmatprep.mubr.msk.f32.mxu1 %vm342_vm0, %v328_v44 }
 0x104   : > { %v307_v47 = vpop.f32.mrb[5].mxu0  ;;  %821 = vmatmul.mubr.msk.f32.gmra.mrb[2].mxu1 %vm342_vm0, %v329_v45  ;;  %v331_v49 = vmax.f32 %v805_v46, 0.0 }
 0x105   : > { %v330_v48 = vmax.f32 %v307_v47, 0.0 }
 0x107   : > { %v808_v50 = vpop.f32.mrb[6].mxu0  ;;  %823 = vmatprep.mubr.msk.f32.mxu1 %vm342_vm0, %v330_v48 }
 0x108   : > { %v317_v51 = vpop.f32.mrb[7].mxu0  ;;  %824 = vmatmul.mubr.msk.f32.gmra.mrb[4].mxu1 %vm342_vm0, %v331_v49  ;;  %v333_v53 = vmax.f32 %v808_v50, 0.0 }
 0x109   : > { %v332_v52 = vmax.f32 %v317_v51, 0.0 }
 0x10b   : > { %826 = vmatprep.mubr.msk.f32.mxu1 %vm342_vm0, %v332_v52 }
 0x10c   : > { %827 = vmatmul.mubr.msk.f32.gmra.mrb[6].mxu1 %vm342_vm0, %v333_v53 }
 0x1d3   : > { %v819_v61 = vpop.f32.mrb[0].mxu1 }
 0x1d4   : > { %v439_v62 = vadd.f32 %v819_v61, %v1042_v58  ;;  %v433_v0 = vpop.f32.mrb[1].mxu1 }
 0x1d5   : > { %v1049_v1 = vadd.f32 %v433_v0, %v1042_v58 }
 0x1d6   : > { %v473_v2 = vrot.slane %v439_v62, 1  ;;  %v496_v17 = vmul.f32 %v1051_v3, %v439_v62  ;;  %v527_v22 = vmul.f32 %v1059_v9, %v439_v62 }
 0x1d7   : > { %v472_v5 = vrot.slane %v1049_v1, 1  ;;  %v822_v7 = vpop.f32.mrb[2].mxu1  ;;  %v495_v14 = vmul.f32 %v1051_v3, %v1049_v1  ;;  %v534_v24 = vmul.f32 %v1059_v9, %v1049_v1 }
 0x1d8   : > { %v449_v10 = vadd.f32 %v822_v7, %v1042_v58  ;;  %v443_v11 = vpop.f32.mrb[3].mxu1 }
 0x1d9   : > { %v489_v12 = vsel %vm482_vm1, %v472_v5, %v473_v2  ;;  %v444_v13 = vadd.f32 %v443_v11, %v1042_v58 }
 0x1da   : > { %v507_v15 = vmul.f32 %v1054_v4, %v489_v12  ;;  %v475_v16 = vrot.slane %v449_v10, 1  ;;  %v554_v35 = vmul.f32 %v1069_v18, %v489_v12  ;;  %v529_v36 = vmul.f32 %v1059_v9, %v449_v10 }
 0x1db   : > { %v474_v19 = vrot.slane %v444_v13, 1  ;;  %v825_v21 = vpop.f32.mrb[4].mxu1  ;;  %v497_v29 = vmul.f32 %v1051_v3, %v444_v13  ;;  %v528_v37 = vmul.f32 %v1059_v9, %v444_v13  ;;  %v498_v45 = vmul.f32 %v1051_v3, %v449_v10 }
 0x1dc   : > { %v515_v23 = vadd.f32 %v507_v15, %v495_v14  ;;  %v459_v25 = vadd.f32 %v825_v21, %v1042_v58  ;;  %v453_v26 = vpop.f32.mrb[5].mxu1 }
 0x1dd   : > { %v487_v27 = vsel %vm482_vm1, %v474_v19, %v475_v16  ;;  %v488_v28 = vsel %vm482_vm1, %v473_v2, %v474_v19  ;;  %v454_v30 = vadd.f32 %v453_v26, %v1042_v58 }
 0x1de   : > { %v535_v31 = vadd.f32 %v527_v22, %v515_v23  ;;  %v508_v32 = vmul.f32 %v1054_v4, %v488_v28  ;;  %v509_v33 = vmul.f32 %v1054_v4, %v487_v27  ;;  %v547_v34 = vmul.f32 %v1069_v18, %v488_v28 }
 0x1df   : > { %v477_v38 = vrot.slane %v459_v25, 1  ;;  %v828_v39 = vpop.f32.mrb[6].mxu1  ;;  %v476_v43 = vrot.slane %v454_v30, 1  ;;  %v548_v46 = vmul.f32 %v1069_v18, %v487_v27  ;;  %v499_v47 = vmul.f32 %v1051_v3, %v454_v30 }
 0x1e0   : > { %v516_v40 = vadd.f32 %v508_v32, %v496_v17  ;;  %v517_v41 = vadd.f32 %v509_v33, %v497_v29  ;;  %v555_v42 = vadd.f32 %v547_v34, %v535_v31  ;;  %v463_v44 = vpop.f32.mrb[7].mxu1  ;;  %v469_v48 = vadd.f32 %v828_v39, %v1042_v58 }
 0x1e1   : > { %v485_v52 = vsel %vm482_vm1, %v476_v43, %v477_v38  ;;  %v486_v53 = vsel %vm482_vm1, %v475_v16, %v476_v43  ;;  %v464_v57 = vadd.f32 %v463_v44, %v1042_v58  ;;  %v531_v63 = vmul.f32 %v1059_v9, %v459_v25 }
 0x1e2   : > { %v536_v49 = vadd.f32 %v528_v37, %v516_v40  ;;  %v537_v50 = vadd.f32 %v529_v36, %v517_v41  ;;  %v1094_v51 = vadd.f32 %v1071_v20, %v555_v42  ;;  %v511_v54 = vmul.f32 %v1054_v4, %v485_v52 }
 0x1e3   : > { %v479_v56 = vrot.slane %v469_v48, 1  ;;  %v510_v61 = vmul.f32 %v1054_v4, %v486_v53  ;;  %v549_v62 = vmul.f32 %v1069_v18, %v486_v53  ;;  %v530_v1 = vmul.f32 %v1059_v9, %v454_v30 }
 0x1e4   : > { %v556_v59 = vadd.f32 %v548_v46, %v536_v49  ;;  %v719_v60 = vmul.f32 -1.442695, %v1094_v51  ;;  %v519_v0 = vadd.f32 %v511_v54, %v499_v47  ;;  %v502_v10 = vmul.f32 %v1051_v3, %v469_v48 }
 0x1e5   : > { %v490_v2 = vsel %vm482_vm1, %v479_v56, %v472_v5  ;;  %v518_v58 = vadd.f32 %v510_v61, %v498_v45  ;;  %v557_v7 = vadd.f32 %v549_v62, %v537_v50  ;;  %v478_v12 = vrot.slane %v464_v57, 1 }
 0x1e6   : > { %v1110_v6 = vadd.f32 %v1071_v20, %v556_v59  ;;  %878 = vpow2.f32 %v719_v60  ;;  %v539_v8 = vadd.f32 %v531_v63, %v519_v0  ;;  %v514_v11 = vmul.f32 %v1054_v4, %v490_v2 }
 0x1e7   : > { %v538_v14 = vadd.f32 %v530_v1, %v518_v58  ;;  %v550_v15 = vmul.f32 %v1069_v18, %v485_v52  ;;  %v1117_v16 = vadd.f32 %v1071_v20, %v557_v7  ;;  %v500_v5 = vmul.f32 %v1051_v3, %v459_v25 }
 0x1e8   : > { %v720_v13 = vmul.f32 -1.442695, %v1110_v6  ;;  %v522_v17 = vadd.f32 %v514_v11, %v502_v10  ;;  %v483_v19 = vsel %vm482_vm1, %v478_v12, %v479_v56  ;;  %v484_v21 = vsel %vm482_vm1, %v477_v38, %v478_v12 }
 0x1e9   : > { %v558_v22 = vadd.f32 %v550_v15, %v538_v14  ;;  %v721_v23 = vmul.f32 -1.442695, %v1117_v16  ;;  %v512_v26 = vmul.f32 %v1054_v4, %v484_v21  ;;  %v501_v28 = vmul.f32 %v1051_v3, %v464_v57 }
 0x1ea   : > { %880 = vpow2.f32 %v720_v13  ;;  %v542_v27 = vadd.f32 %v534_v24, %v522_v17  ;;  %v513_v29 = vmul.f32 %v1054_v4, %v483_v19  ;;  %v551_v25 = vmul.f32 %v1069_v18, %v484_v21 }
 0x1eb   : > { %v1130_v30 = vadd.f32 %v1071_v20, %v558_v22  ;;  %882 = vpow2.f32 %v721_v23  ;;  %v520_v31 = vadd.f32 %v512_v26, %v500_v5  ;;  %v532_v32 = vmul.f32 %v1059_v9, %v464_v57 }
 0x1ec   : > { %v533_v33 = vmul.f32 %v1059_v9, %v469_v48  ;;  %v562_v34 = vadd.f32 %v554_v35, %v542_v27  ;;  %v521_v36 = vadd.f32 %v513_v29, %v501_v28  ;;  %v559_v37 = vadd.f32 %v551_v25, %v539_v8 }
 0x1ed   : > { %v722_v24 = vmul.f32 -1.442695, %v1130_v30  ;;  %v540_v38 = vadd.f32 %v532_v32, %v520_v31  ;;  %v552_v3 = vmul.f32 %v1069_v18, %v483_v19  ;;  %v553_v4 = vmul.f32 %v1069_v18, %v490_v2 }
 0x1ee   : > { %v1138_v39 = vadd.f32 %v1071_v20, %v562_v34  ;;  %v541_v40 = vadd.f32 %v533_v33, %v521_v36  ;;  %v571_v41 = vadd.f32 %v1071_v20, %v559_v37  ;;  %v918_v1 = vmov 0.0  }
 0x1ef   : > { %884 = vpow2.f32 %v722_v24  ;;  %v560_v43 = vadd.f32 %v552_v3, %v540_v38  ;;  %v633_v2 = vsel %vm482_vm1, 0.020408163, %v918_v1 }
 0x1f0   : > { %v879_v42 = vpop.eup %878  ;;  %v726_v35 = vmul.f32 -1.442695, %v1138_v39  ;;  %v561_v44 = vadd.f32 %v553_v4, %v541_v40  ;;  %v723_v45 = vmul.f32 -1.442695, %v571_v41 }
 0x1f1   : > { %v599_v9 = vadd.f32 1.0, %v879_v42  ;;  %v572_v46 = vadd.f32 %v1071_v20, %v560_v43 }
 0x1f2   : > { %v573_v47 = vadd.f32 %v1071_v20, %v561_v44 }
 0x1f3   : > { %886 = vrcp.f32 %v599_v9  ;;  %v724_v48 = vmul.f32 -1.442695, %v572_v46 }
 0x1f4   : > { %v881_v18 = vpop.eup %880  ;;  %888 = vpow2.f32 %v726_v35  ;;  %v725_v50 = vmul.f32 -1.442695, %v573_v47 }
 0x1f5   : > { %v600_v49 = vadd.f32 1.0, %v881_v18  ;;  %890 = vpow2.f32 %v723_v45  ;;  %v883_v52 = vpop.eup %882 }
 0x1f6   : > { %892 = vpow2.f32 %v724_v48  ;;  %v601_v53 = vadd.f32 1.0, %v883_v52 }
 0x1f7   : > { %894 = vrcp.f32 %v600_v49 }
 0x1f8   : > { %896 = vpow2.f32 %v725_v50 }
 0x1f9   : > { %898 = vrcp.f32 %v601_v53  ;;  %v885_v54 = vpop.eup %884 }
 0x1fa   : > { %v602_v56 = vadd.f32 1.0, %v885_v54 }
 0x1fc   : > { %900 = vrcp.f32 %v602_v56 }
 0x1fd   : > { %v887_v57 = vpop.eup %886 }
 0x1fe   : > { %v889_v59 = vpop.eup %888  ;;  %v623_v20 = vmul.f32 %v887_v57, %v1094_v51 }
 0x1ff   : > { %v891_v60 = vpop.eup %890  ;;  %v606_v62 = vadd.f32 1.0, %v889_v59 }
 0x200   : > { %v893_v61 = vpop.eup %892  ;;  %v603_v63 = vadd.f32 1.0, %v891_v60  ;;  %v635_v12 = vmul.f32 %v633_v2, %v623_v20 }
 0x201   : > { %v895_v0 = vpop.eup %894  ;;  %v604_v58 = vadd.f32 1.0, %v893_v61 }
 0x202   : > { %v897_v7 = vpop.eup %896  ;;  %v624_v8 = vmul.f32 %v895_v0, %v1110_v6  ;;  %902 = vrcp.f32 %v603_v63 }
 0x203   : > { %v899_v10 = vpop.eup %898  ;;  %v605_v11 = vadd.f32 1.0, %v897_v7  ;;  %904 = vrcp.f32 %v604_v58 }
 0x204   : > { %v636_v13 = vmul.f32 %v633_v2, %v624_v8  ;;  %v625_v14 = vmul.f32 %v899_v10, %v1117_v16  ;;  %906 = vrcp.f32 %v606_v62 }
 0x205   : > { %908 = vrcp.f32 %v605_v11 }
 0x206   : > { %v643_v51 = vadd.f32 %v636_v13, %v635_v12  ;;  %v637_v15 = vmul.f32 %v633_v2, %v625_v14  ;;  %v901_v5 = vpop.eup %900 }
 0x207   : > { %v626_v55 = vmul.f32 %v901_v5, %v1130_v30 }
 0x208   : > { %v644_v17 = vadd.f32 %v643_v51, %v637_v15 }
 0x209   : > { %v638_v19 = vmul.f32 %v633_v2, %v626_v55 }
 0x20b   : > { %v645_v22 = vadd.f32 %v644_v17, %v638_v19 }
 0x20c   : > { %v903_v21 = vpop.eup %902 }
 0x20d   : > { %v905_v6 = vpop.eup %904  ;;  %v627_v23 = vmul.f32 %v903_v21, %v571_v41 }
 0x20e   : > { %v907_v26 = vpop.eup %906  ;;  %v628_v27 = vmul.f32 %v905_v6, %v572_v46 }
 0x20f   : > { %v909_v28 = vpop.eup %908  ;;  %v639_v29 = vmul.f32 %v633_v2, %v627_v23  ;;  %v630_v31 = vmul.f32 %v907_v26, %v1138_v39 }
 0x210   : > { %v629_v16 = vmul.f32 %v909_v28, %v573_v47  ;;  %v640_v25 = vmul.f32 %v633_v2, %v628_v27 }
 0x211   : > { %v646_v32 = vadd.f32 %v645_v22, %v639_v29  ;;  %v642_v30 = vmul.f32 0.0, %v630_v31 }
 0x212   : > { %v641_v33 = vmul.f32 %v633_v2, %v629_v16 }
 0x213   : > { %v647_v34 = vadd.f32 %v646_v32, %v640_v25 }
 0x215   : > { %v648_v36 = vadd.f32 %v647_v34, %v641_v33 }
 0x217   : > { %v649_v37 = vadd.f32 %v648_v36, %v642_v30 }
 0x219   : > { %v650_v24 = vrot.slane %v649_v37, 4 }
 0x21b   : > { %v651_v38 = vadd.f32 %v650_v24, %v649_v37 }
 0x21d   : > { %v652_v3 = vrot.slane %v651_v38, 2 }
 0x21f   : > { %v653_v4 = vadd.f32 %v652_v3, %v651_v38 }
 0x221   : > { %v654_v40 = vrot.slane %v653_v4, 1 }
 0x223   : > { %v655_v41 = vadd.f32 %v654_v40, %v653_v4 }
 0x225   : > { %656 = vst [vmem:[%s195_s18] sm:$0x1] %v655_v41 }
 0x226 PF: > { %s14_s15 = sadd.s32 1, %s916_s15  }
 0x227   : > { %p11_p5 = scmp.ge.s32.totalorder %s14_s15, 4  }
 0x229   :  { %13 = sbr.rel (!%p11_p5) target bundleno = 1 (0x1), region = 66 }

</bundles_post_ra>
